<compile_context>
chip_gen: v5e
topology: v5e:2x2
jax: 0.10.0
libtpu: 0.0.40
codegen_flags: <defaults>
</compile_context>

<pallas_src>
import jax
import jax.numpy as jnp
from jax.experimental import pallas as pl
from jax.experimental.pallas import tpu as pltpu


def _round_up(x: int, m: int) -> int:
    return ((x + m - 1) // m) * m


def _make_ce_ls_kernel(num_classes: int, epsilon: float):
    smooth_w = float(epsilon) / float(num_classes)
    target_w = (1.0 - float(epsilon)) + smooth_w   # weight on the target class

    def kernel(targets_ref, logits_ref, rowloss_ref):
        # (TILE_N, C) tile of logits; cast to f32 inside the kernel so bf16
        # inputs only cost 2 bytes/elem of HBM traffic.
        x = logits_ref[...].astype(jnp.float32)
        tn, c = x.shape

        # Numerically stable log-sum-exp along the class axis.
        m = jnp.max(x, axis=1, keepdims=True)                       # (TILE_N, 1)
        shifted = x - m                                             # (TILE_N, C)
        lse = jnp.log(jnp.sum(jnp.exp(shifted), axis=1, keepdims=True))

        # Fused one-hot / smoothing weights (sum_c w = 1), single reduction:
        #   row_loss = lse - sum_c w_c * shifted_c
        class_ids = jax.lax.broadcasted_iota(jnp.int32, (tn, c), 1)
        tgt = targets_ref[...]                                      # (TILE_N, 1)
        w = jnp.where(class_ids == tgt, target_w, smooth_w)         # (TILE_N, C)

        # Rows with global index >= N (partial tail block) compute garbage here,
        # but every op above is row-local and Pallas drops their output rows on
        # writeback, so no explicit masking is needed.
        rowloss_ref[...] = lse - jnp.sum(shifted * w, axis=1, keepdims=True)

    return kernel


_DEFAULT_VMEM_BUDGET = 40 * 1024 * 1024   # fits v7x (64 MiB VMEM / TensorCore)


def _vmem_budget_bytes() -> int:
    budget = _DEFAULT_VMEM_BUDGET
    try:
        cap = pltpu.get_tpu_info().vmem_capacity_bytes
        if cap >= 96 * 1024 * 1024:        # v5e / v6e: 128 MiB physical VMEM
            budget = 80 * 1024 * 1024
    except Exception:
        pass                               # conservative default works everywhere
    return budget


def _choose_tile_n(n: int, c: int, in_itemsize: int, vmem_budget: int) -> int:
    # Live VMEM per row: the double-buffered logits block in its own dtype,
    # ~3 f32 (TILE_N, C) intermediates (x, shifted, exp/weighted product), plus
    # the (tiny) double-buffered targets + per-row-loss columns.
    per_row = 2 * c * in_itemsize + 3 * c * 4 + 2 * 4 + 2 * 4
    rows_budget = max(8, vmem_budget // per_row)
    tile = min(rows_budget, _round_up(n, 8))

    # v7x megacore: prefer >= 2 grid steps when each half still forms a
    # reasonably sized (>= 1 MiB) logits block; no-op on v5e/v6e (1 TC).
    half = _round_up(pl.cdiv(n, 2), 8)
    if half * c * in_itemsize >= (1 << 20):
        tile = min(tile, half)

    tile = max(8, (tile // 8) * 8)
    return tile


def cross_entropy_label_smooth(inputs, targets, *, num_classes, epsilon,
                               tile_n: int | None = None):
    """inputs: [N, C] float logits; targets: [N] int class ids. Returns scalar."""
    n, c = inputs.shape
    assert c == num_classes

    itemsize = jnp.dtype(inputs.dtype).itemsize
    vmem_budget = _vmem_budget_bytes()
    if tile_n is None:
        tile_n = _choose_tile_n(n, c, itemsize, vmem_budget)
    assert tile_n % 8 == 0

    # Tiny wrapper-side reshape of targets only; logits go to the kernel as-is
    # (no padding copy).  The tail block (when tile_n does not divide n) is
    # handled by Pallas' partial-block load/store masking.
    targets_2d = targets.astype(jnp.int32).reshape(n, 1)
    num_tiles = pl.cdiv(n, tile_n)

    row_losses = pl.pallas_call(
        _make_ce_ls_kernel(num_classes, epsilon),
        out_shape=jax.ShapeDtypeStruct((n, 1), jnp.float32),
        grid_spec=pltpu.PrefetchScalarGridSpec(
            num_scalar_prefetch=0,
            grid=(num_tiles,),
            in_specs=[
                pl.BlockSpec((tile_n, 1), lambda i: (i, 0)),   # targets
                pl.BlockSpec((tile_n, c), lambda i: (i, 0)),   # logits
            ],
            out_specs=pl.BlockSpec((tile_n, 1), lambda i: (i, 0)),
        ),
        compiler_params=pltpu.CompilerParams(
            dimension_semantics=("parallel",),
            vmem_limit_bytes=vmem_budget + 8 * 1024 * 1024,
        ),
        cost_estimate=pl.CostEstimate(
            flops=6 * n * c,
            transcendentals=n * c,
            bytes_accessed=n * c * itemsize + n * 4 + n * 4,
        ),
    )(targets_2d, inputs)

    # Final mean over rows is a tiny (8N-byte) wrapper-side reduction.
    return jnp.sum(row_losses) / n


def _reference(inputs, targets, num_classes, epsilon):
    log_probs = jax.nn.log_softmax(inputs.astype(jnp.float32), axis=1)
    one_hot = jax.nn.one_hot(targets, num_classes, dtype=jnp.float32)
    smooth = (1.0 - epsilon) * one_hot + epsilon / num_classes
    return (-smooth * log_probs).mean(0).sum()


if __name__ == "__main__":
    num_classes = 32
    epsilon = 0.1

    key = jax.random.PRNGKey(0)
    k1, k2, k3, k4, k5, k6 = jax.random.split(key, 6)

    # Case 1: small batch, single tile, f32.
    batch = 8
    logits = jax.random.normal(k1, (batch, num_classes), dtype=jnp.float32)
    targets = jax.random.randint(k2, (batch,), 0, num_classes, dtype=jnp.int32)
    loss = cross_entropy_label_smooth(
        logits, targets, num_classes=num_classes, epsilon=epsilon)
    loss = jax.block_until_ready(loss)
    ref = _reference(logits, targets, num_classes, epsilon)
    assert jnp.allclose(loss, ref, atol=1e-5, rtol=1e-5), (loss, ref)

    # Case 2: batch not a multiple of the (forced small) tile -> multi-step grid
    # with a partial tail block (exercises the pad-free boundary-masking path).
    batch2 = 20
    logits2 = jax.random.normal(k3, (batch2, num_classes), dtype=jnp.float32)
    targets2 = jax.random.randint(k4, (batch2,), 0, num_classes, dtype=jnp.int32)
    loss2 = cross_entropy_label_smooth(
        logits2, targets2, num_classes=num_classes, epsilon=epsilon, tile_n=8)
    loss2 = jax.block_until_ready(loss2)
    ref2 = _reference(logits2, targets2, num_classes, epsilon)
    assert jnp.allclose(loss2, ref2, atol=1e-5, rtol=1e-5), (loss2, ref2)

    # Case 3: bf16 logits (half the HBM traffic; kernel upcasts to f32 in-vreg).
    batch3 = 24
    logits3 = jax.random.normal(k5, (batch3, num_classes), dtype=jnp.bfloat16)
    targets3 = jax.random.randint(k6, (batch3,), 0, num_classes, dtype=jnp.int32)
    loss3 = cross_entropy_label_smooth(
        logits3, targets3, num_classes=num_classes, epsilon=epsilon)
    loss3 = jax.block_until_ready(loss3)
    ref3 = _reference(logits3, targets3, num_classes, epsilon)
    assert jnp.allclose(loss3, ref3, atol=1e-4, rtol=1e-4), (loss3, ref3)

    print("KERNEL_OK")
</pallas_src>

<mosaic_0001>
module attributes {stable_mosaic.version = 11 : i64} {
  func.func @kernel(%arg0: i32, %arg1: memref<8x1xi32, #tpu.memory_space<vmem>>, %arg2: memref<8x32xf32, #tpu.memory_space<vmem>>, %arg3: memref<8x1xf32, #tpu.memory_space<vmem>>) attributes {dimension_semantics = [#tpu.dimension_semantics<parallel>], iteration_bounds = array<i64: 1>, scalar_prefetch = 0 : i64, scratch_operands = 0 : i64, tpu.core_type = #tpu.core_type<tc>, window_params = [{transform_indices = @transform_0, window_bounds = array<i64: 8, 1>}, {transform_indices = @transform_1, window_bounds = array<i64: 8, 32>}, {transform_indices = @transform_2, window_bounds = array<i64: 8, 1>}]} {
    %c0 = arith.constant 0 : index
    %c0_0 = arith.constant 0 : index
    %0 = vector.load %arg2[%c0, %c0_0] : memref<8x32xf32, #tpu.memory_space<vmem>>, vector<8x32xf32>
    %cst = arith.constant dense<0xFF800000> : vector<8xf32>
    %1 = vector.multi_reduction <maximumf>, %0, %cst [1] : vector<8x32xf32> to vector<8xf32>
    %2 = vector.shape_cast %1 : vector<8xf32> to vector<8x1xf32>
    %3 = vector.broadcast %2 : vector<8x1xf32> to vector<8x32xf32>
    %4 = arith.subf %0, %3 : vector<8x32xf32>
    %5 = math.exp %4 : vector<8x32xf32>
    %cst_1 = arith.constant dense<0.000000e+00> : vector<8xf32>
    %6 = vector.multi_reduction <add>, %5, %cst_1 [1] : vector<8x32xf32> to vector<8xf32>
    %7 = vector.shape_cast %6 : vector<8xf32> to vector<8x1xf32>
    %8 = math.log %7 : vector<8x1xf32>
    %9 = tpu.iota {dimensions = array<i32: 1>} : vector<8x32xi32>
    %c0_2 = arith.constant 0 : index
    %c0_3 = arith.constant 0 : index
    %10 = vector.load %arg1[%c0_2, %c0_3] : memref<8x1xi32, #tpu.memory_space<vmem>>, vector<8x1xi32>
    %11 = vector.broadcast %10 : vector<8x1xi32> to vector<8x32xi32>
    %12 = arith.cmpi eq, %9, %11 : vector<8x32xi32>
    %cst_4 = arith.constant 0.903124988 : f32
    %cst_5 = arith.constant 3.125000e-03 : f32
    %13 = vector.broadcast %cst_4 : f32 to vector<8x32xf32>
    %14 = vector.broadcast %cst_5 : f32 to vector<8x32xf32>
    %15 = arith.select %12, %13, %14 : vector<8x32xi1>, vector<8x32xf32>
    %16 = arith.mulf %4, %15 : vector<8x32xf32>
    %cst_6 = arith.constant dense<0.000000e+00> : vector<8xf32>
    %17 = vector.multi_reduction <add>, %16, %cst_6 [1] : vector<8x32xf32> to vector<8xf32>
    %18 = vector.shape_cast %17 : vector<8xf32> to vector<8x1xf32>
    %19 = arith.subf %8, %18 : vector<8x1xf32>
    %c0_7 = arith.constant 0 : index
    %c0_8 = arith.constant 0 : index
    %20 = vector.load %arg3[%c0_7, %c0_8] : memref<8x1xf32, #tpu.memory_space<vmem>>, vector<8x1xf32>
    tpu.vector_store %arg3[%c0_7, %c0_8], %19 {strides = array<i32>} : memref<8x1xf32, #tpu.memory_space<vmem>>, vector<8x1xf32>,
    return
  }
  func.func @transform_0(%arg0: i32) -> (i32, i32) {
    %c0_i32 = arith.constant 0 : i32
    %c0_i32_0 = arith.constant 0 : i32
    return %arg0, %c0_i32 : i32, i32
  }
  func.func @transform_1(%arg0: i32) -> (i32, i32) {
    %c0_i32 = arith.constant 0 : i32
    %c0_i32_0 = arith.constant 0 : i32
    return %arg0, %c0_i32 : i32, i32
  }
  func.func @transform_2(%arg0: i32) -> (i32, i32) {
    %c0_i32 = arith.constant 0 : i32
    %c0_i32_0 = arith.constant 0 : i32
    return %arg0, %c0_i32 : i32, i32
  }
}

</mosaic_0001>

<bundles_post_ra>
// kernel: tpu_custom_call.1
= control target key start
LH: loop header
LB: loop body
LE: loop exit
PB: predicated region body
PF: predicated region fallthrough
CT: control target
= control target key end

     0   :  { %vm12_vm0 = vcmask 261120   ;;  %v50_v1 = vmov 0   ;;  %v24_v9 = vlaneseq  ;;  %v51_v12 = vmov 0.003125   ;;  %s79_s1 = inlined_call_operand.vmem [shape: f32[8,32], index: 1, kind: input, shape index: {}]   ;;  %s80_s0 = inlined_call_operand.vmem [shape: s32[8,1], index: 0, kind: input, shape index: {}]   ;;  %s81_s2 = inlined_call_operand.vmem [shape: f32[8,1], index: 2, kind: output, shape index: {}]  }
   0x1   :  { %v11_v0 = vld [vmem:[%s79_s1] sm:$0xff]  ;;  %45 = vset.pattern.permute.xlu0 %v50_v1  ;;  %vm37_vm2 = vcmask 7168  }
   0x2   :  { %v13_v2 = vsel %vm12_vm0, %v11_v0, -inf  ;;  %v26_v3 = vld [vmem:[%s80_s0] sm:$0xff]  ;;  %v25_v10 = vand.u32 127, %v24_v9 }
   0x3   :  { %14 = vmax.xlane.f32.xlu0 %v13_v2 }
  0x17   :  { %28 = vperm.xlu0 %45, %v26_v3  }
  0x76   :  { %v15_v4 = vpop.xlane.xlu0 %14 }
  0x77   :  { %v16_v5 = vsub.f32 %v11_v0, %v15_v4 }
  0x79   :  { %v17_v6 = vmul.f32 1.442695, %v16_v5 }
  0x7b   :  { %46 = vpow2.f32 %v17_v6 }
  0x81   :  { %v47_v7 = vpop.eup %46 }
  0x82   :  { %v19_v8 = vsel %vm12_vm0, %v47_v7, 0.0 }
  0x83   :  { %20 = vadd.xlane.f32.xlu1 %v19_v8 }
  0x89   :  { %v29_v11 = vpop.permute.xlu0 %28 }
  0x8a   :  { %vm30_vm1 = vcmp.eq.s32.totalorder %v25_v10, %v29_v11 }
  0x8b   :  { %v31_v13 = vsel %vm30_vm1, 0.903125, %v51_v12 }
  0x8c   :  { %v32_v14 = vmul.f32 %v31_v13, %v16_v5 }
  0x8e   :  { %v33_v15 = vsel %vm12_vm0, %v32_v14, 0.0 }
  0x8f   :  { %34 = vadd.xlane.f32.xlu1 %v33_v15 }
  0xf6   :  { %v21_v16 = vpop.xlane.xlu1 %20 }
  0xf7   :  { %48 = vlog2.f32 %v21_v16 }
  0xfd   :  { %v49_v17 = vpop.eup %48 }
  0xfe   :  { %v23_v18 = vmul.f32 0.6931472, %v49_v17 }
 0x102   :  { %v35_v19 = vpop.xlane.xlu1 %34 }
 0x103   :  { %v36_v20 = vsub.f32 %v23_v18, %v35_v19 }
 0x105   :  { %38 = vst.msk [vmem:[%s81_s2] sm:$0xff] %vm37_vm2, %v36_v20 }

</bundles_post_ra>
